<compile_context>
chip_gen: v7x
topology: tpu7x:2x2x1
jax: 0.10.0
libtpu: 0.0.40
codegen_flags: <defaults>
</compile_context>

<pallas_src>
import functools

import jax
import jax.numpy as jnp
from jax.experimental import pallas as pl
from jax.experimental.pallas import tpu as pltpu


def _round_up(n, m):
    return ((n + m - 1) // m) * m


def dqn_mlp_kernel(x_ref, w1_ref, b1_ref, w2_ref, b2_ref, w3_ref, b3_ref, o_ref,
                   *, compute_dtype):
    # fc1: MXU matmul in compute_dtype (bf16 by default), f32 accumulation.
    x = x_ref[...].astype(compute_dtype)
    h1 = jnp.dot(x, w1_ref[...], preferred_element_type=jnp.float32)
    h1 = jnp.maximum(h1 + b1_ref[...], 0.0)          # bias + ReLU in f32
    # Dropout(0.1): identity at inference.
    h2 = jnp.dot(h1.astype(compute_dtype), w2_ref[...],
                 preferred_element_type=jnp.float32)
    h2 = jnp.maximum(h2 + b2_ref[...], 0.0)
    # Dropout(0.1): identity at inference.
    out = jnp.dot(h2.astype(compute_dtype), w3_ref[...],
                  preferred_element_type=jnp.float32) + b3_ref[...]
    o_ref[...] = out.astype(o_ref.dtype)


def init_params(key, input_size, hidden_sizes, out_dim=4, weight_dtype=jnp.bfloat16):
    """nn.Linear-style init (U(+/- 1/sqrt(fan_in))), UNPADDED shapes.

    Weights default to bf16 (halves resident-weight DMA, native MXU dtype on all gens);
    biases stay f32 since bias add + ReLU run in f32 inside the kernel.
    NOTE: do not pad the contraction dims for MXU fill -- the kernel is HBM-bound."""
    dims = [input_size] + list(hidden_sizes) + [out_dim]
    params = {}
    for i, name in enumerate(["1", "2", "3"]):
        fan_in, fan_out = dims[i], dims[i + 1]
        key, kw, kb = jax.random.split(key, 3)
        bound = 1.0 / float(fan_in) ** 0.5
        w = jax.random.uniform(kw, (fan_in, fan_out), dtype=jnp.float32,
                               minval=-bound, maxval=bound)
        b = jax.random.uniform(kb, (1, fan_out), dtype=jnp.float32,
                               minval=-bound, maxval=bound)
        params[f"w{name}"] = w.astype(weight_dtype)
        params[f"b{name}"] = b  # keep f32
    return params


def dqn_forward(x, params, *, block_b=None):
    """x: [B, F] float32. params: unpadded weights/biases from init_params()."""
    w1, b1 = params["w1"], params["b1"]
    w2, b2 = params["w2"], params["b2"]
    w3, b3 = params["w3"], params["b3"]

    B, F = x.shape
    assert w1.shape[0] == F, (w1.shape, F)
    H1 = w1.shape[1]
    H2 = w2.shape[1]
    OUT = w3.shape[1]

    # Batch tile selection:
    #  * small B: one tile (block dim == full array dim is always legal).
    #  * B >= 256: >= 2 tiles (multiple of 8, cap 2048) -> both v7x TCs get work and
    #    the ~0.35us per-grid-step overhead is amortized. VMEM stays tiny.
    if block_b is not None:
        tb = min(block_b, B)
    elif B < 256:
        tb = B
    else:
        tb = min(_round_up((B + 1) // 2, 8), 2048)
    n_tiles = pl.cdiv(B, tb)  # ragged last block handled by Pallas masking

    compute_dtype = w1.dtype
    kernel = functools.partial(dqn_mlp_kernel, compute_dtype=compute_dtype)

    itemsize = jnp.dtype(x.dtype).itemsize
    w_bytes = sum(int(p.size) * jnp.dtype(p.dtype).itemsize
                  for p in (w1, b1, w2, b2, w3, b3))
    cost = pl.CostEstimate(
        flops=2 * B * (F * H1 + H1 * H2 + H2 * OUT),
        transcendentals=0,
        bytes_accessed=int(x.size) * itemsize + w_bytes + B * OUT * itemsize,
    )

    # Weights/biases: constant block index across the batch grid -> stay resident.
    resident = lambda arr: pl.BlockSpec(arr.shape, lambda i: (0, 0))

    out = pl.pallas_call(
        kernel,
        out_shape=jax.ShapeDtypeStruct((B, OUT), x.dtype),
        grid=(n_tiles,),
        in_specs=[
            pl.BlockSpec((tb, F), lambda i: (i, 0)),
            resident(w1), resident(b1),
            resident(w2), resident(b2),
            resident(w3), resident(b3),
        ],
        out_specs=pl.BlockSpec((tb, OUT), lambda i: (i, 0)),
        compiler_params=pltpu.CompilerParams(
            dimension_semantics=("parallel",),
        ),
        cost_estimate=cost,
    )(x, w1, b1, w2, b2, w3, b3)

    return out


def reference_forward(x, params):
    """Pure-JAX f32 reference."""
    w1 = params["w1"].astype(jnp.float32)
    w2 = params["w2"].astype(jnp.float32)
    w3 = params["w3"].astype(jnp.float32)
    b1, b2, b3 = params["b1"], params["b2"], params["b3"]
    h1 = jnp.maximum(x @ w1 + b1, 0.0)
    h2 = jnp.maximum(h1 @ w2 + b2, 0.0)
    return h2 @ w3 + b3


if __name__ == "__main__":
    # VisionDQN-like shapes: ray_count=8, ray_length=4 -> input = 8*4*3 = 96,
    # hidden_sizes=[256, 128], 4 actions.
    ray_count, ray_length = 8, 4
    input_size = ray_count * ray_length * 3  # 96
    hidden_sizes = [256, 128]
    out_dim = 4

    key = jax.random.PRNGKey(0)

    # --- small-batch correctness check (f32 weights, tight tolerance, single tile) ---
    batch = 2
    key, kx = jax.random.split(key)
    x = jax.random.normal(kx, (batch, input_size), dtype=jnp.float32)
    key, kp = jax.random.split(key)
    params_f32 = init_params(kp, input_size, hidden_sizes, out_dim,
                             weight_dtype=jnp.float32)

    out = jax.block_until_ready(dqn_forward(x, params_f32))
    ref = reference_forward(x, params_f32)
    assert out.shape == (batch, out_dim), out.shape
    assert jnp.allclose(out, ref, atol=1e-4, rtol=1e-4), (
        f"f32 max abs err {float(jnp.max(jnp.abs(out - ref)))}"
    )

    # --- larger, ragged batch (300 -> 2 tiles of 152, masked last block) with
    #     default bf16 weights (native MXU dtype, f32 accumulation). ---
    batch2 = 300
    key, kx2 = jax.random.split(key)
    x2 = jax.random.normal(kx2, (batch2, input_size), dtype=jnp.float32)
    key, kp2 = jax.random.split(key)
    params_bf16 = init_params(kp2, input_size, hidden_sizes, out_dim)  # bf16 default

    out2 = jax.block_until_ready(dqn_forward(x2, params_bf16))
    ref2 = reference_forward(x2, params_bf16)
    assert out2.shape == (batch2, out_dim), out2.shape
    assert jnp.allclose(out2, ref2, atol=5e-2, rtol=5e-2), (
        f"bf16 max abs err {float(jnp.max(jnp.abs(out2 - ref2)))}"
    )

    print("KERNEL_OK")
</pallas_src>

<mosaic_0001>
module attributes {stable_mosaic.version = 11 : i64} {
  func.func @dqn_mlp_kernel(%arg0: i32, %arg1: memref<2x96xf32, #tpu.memory_space<vmem>>, %arg2: memref<96x256xf32, #tpu.memory_space<vmem>>, %arg3: memref<1x256xf32, #tpu.memory_space<vmem>>, %arg4: memref<256x128xf32, #tpu.memory_space<vmem>>, %arg5: memref<1x128xf32, #tpu.memory_space<vmem>>, %arg6: memref<128x4xf32, #tpu.memory_space<vmem>>, %arg7: memref<1x4xf32, #tpu.memory_space<vmem>>, %arg8: memref<2x4xf32, #tpu.memory_space<vmem>>) attributes {dimension_semantics = [#tpu.dimension_semantics<parallel>], iteration_bounds = array<i64: 1>, scalar_prefetch = 0 : i64, scratch_operands = 0 : i64, tpu.core_type = #tpu.core_type<tc>, window_params = [{transform_indices = @transform_0, window_bounds = array<i64: 2, 96>}, {pipeline_mode = #tpu.pipeline_mode<synchronous>, transform_indices = @transform_1, window_bounds = array<i64: 96, 256>}, {pipeline_mode = #tpu.pipeline_mode<synchronous>, transform_indices = @transform_2, window_bounds = array<i64: 1, 256>}, {pipeline_mode = #tpu.pipeline_mode<synchronous>, transform_indices = @transform_3, window_bounds = array<i64: 256, 128>}, {pipeline_mode = #tpu.pipeline_mode<synchronous>, transform_indices = @transform_4, window_bounds = array<i64: 1, 128>}, {pipeline_mode = #tpu.pipeline_mode<synchronous>, transform_indices = @transform_5, window_bounds = array<i64: 128, 4>}, {pipeline_mode = #tpu.pipeline_mode<synchronous>, transform_indices = @transform_6, window_bounds = array<i64: 1, 4>}, {transform_indices = @transform_7, window_bounds = array<i64: 2, 4>}]} {
    %c0 = arith.constant 0 : index
    %c0_0 = arith.constant 0 : index
    %0 = vector.load %arg1[%c0, %c0_0] : memref<2x96xf32, #tpu.memory_space<vmem>>, vector<2x96xf32>
    %c0_1 = arith.constant 0 : index
    %c0_2 = arith.constant 0 : index
    %1 = vector.load %arg2[%c0_1, %c0_2] : memref<96x256xf32, #tpu.memory_space<vmem>>, vector<96x256xf32>
    %cst = arith.constant dense<0.000000e+00> : vector<2x256xf32>
    %2 = tpu.matmul %0, %1, %cst {dimension_numbers = #tpu.dot_dimension_numbers<[1], [0], [0], [1], [0, 0, 1, 1], [], []>} : vector<2x96xf32>, vector<96x256xf32>, vector<2x256xf32> -> vector<2x256xf32>
    %c0_3 = arith.constant 0 : index
    %c0_4 = arith.constant 0 : index
    %3 = vector.load %arg3[%c0_3, %c0_4] : memref<1x256xf32, #tpu.memory_space<vmem>>, vector<1x256xf32>
    %4 = vector.broadcast %3 : vector<1x256xf32> to vector<2x256xf32>
    %5 = arith.addf %2, %4 : vector<2x256xf32>
    %cst_5 = arith.constant 0.000000e+00 : f32
    %6 = vector.broadcast %cst_5 : f32 to vector<2x256xf32>
    %7 = arith.maximumf %5, %6 : vector<2x256xf32>
    %c0_6 = arith.constant 0 : index
    %c0_7 = arith.constant 0 : index
    %8 = vector.load %arg4[%c0_6, %c0_7] : memref<256x128xf32, #tpu.memory_space<vmem>>, vector<256x128xf32>
    %cst_8 = arith.constant dense<0.000000e+00> : vector<2x128xf32>
    %9 = tpu.matmul %7, %8, %cst_8 {dimension_numbers = #tpu.dot_dimension_numbers<[1], [0], [0], [1], [0, 0, 1, 1], [], []>} : vector<2x256xf32>, vector<256x128xf32>, vector<2x128xf32> -> vector<2x128xf32>
    %c0_9 = arith.constant 0 : index
    %c0_10 = arith.constant 0 : index
    %10 = vector.load %arg5[%c0_9, %c0_10] : memref<1x128xf32, #tpu.memory_space<vmem>>, vector<1x128xf32>
    %11 = vector.broadcast %10 : vector<1x128xf32> to vector<2x128xf32>
    %12 = arith.addf %9, %11 : vector<2x128xf32>
    %cst_11 = arith.constant 0.000000e+00 : f32
    %13 = vector.broadcast %cst_11 : f32 to vector<2x128xf32>
    %14 = arith.maximumf %12, %13 : vector<2x128xf32>
    %c0_12 = arith.constant 0 : index
    %c0_13 = arith.constant 0 : index
    %15 = vector.load %arg6[%c0_12, %c0_13] : memref<128x4xf32, #tpu.memory_space<vmem>>, vector<128x4xf32>
    %cst_14 = arith.constant dense<0.000000e+00> : vector<2x4xf32>
    %16 = tpu.matmul %14, %15, %cst_14 {dimension_numbers = #tpu.dot_dimension_numbers<[1], [0], [0], [1], [0, 0, 1, 1], [], []>} : vector<2x128xf32>, vector<128x4xf32>, vector<2x4xf32> -> vector<2x4xf32>
    %c0_15 = arith.constant 0 : index
    %c0_16 = arith.constant 0 : index
    %17 = vector.load %arg7[%c0_15, %c0_16] : memref<1x4xf32, #tpu.memory_space<vmem>>, vector<1x4xf32>
    %18 = vector.broadcast %17 : vector<1x4xf32> to vector<2x4xf32>
    %19 = arith.addf %16, %18 : vector<2x4xf32>
    %c0_17 = arith.constant 0 : index
    %c0_18 = arith.constant 0 : index
    %20 = vector.load %arg8[%c0_17, %c0_18] : memref<2x4xf32, #tpu.memory_space<vmem>>, vector<2x4xf32>
    tpu.vector_store %arg8[%c0_17, %c0_18], %19 {strides = array<i32>} : memref<2x4xf32, #tpu.memory_space<vmem>>, vector<2x4xf32>,
    return
  }
  func.func @transform_0(%arg0: i32) -> (i32, i32) {
    %c0_i32 = arith.constant 0 : i32
    %c0_i32_0 = arith.constant 0 : i32
    return %arg0, %c0_i32 : i32, i32
  }
  func.func @transform_1(%arg0: i32) -> (i32, i32) {
    %c0_i32 = arith.constant 0 : i32
    %c0_i32_0 = arith.constant 0 : i32
    %c0_i32_1 = arith.constant 0 : i32
    return %c0_i32, %c0_i32_0 : i32, i32
  }
  func.func @transform_2(%arg0: i32) -> (i32, i32) {
    %c0_i32 = arith.constant 0 : i32
    %c0_i32_0 = arith.constant 0 : i32
    %c0_i32_1 = arith.constant 0 : i32
    return %c0_i32, %c0_i32_0 : i32, i32
  }
  func.func @transform_3(%arg0: i32) -> (i32, i32) {
    %c0_i32 = arith.constant 0 : i32
    %c0_i32_0 = arith.constant 0 : i32
    %c0_i32_1 = arith.constant 0 : i32
    return %c0_i32, %c0_i32_0 : i32, i32
  }
  func.func @transform_4(%arg0: i32) -> (i32, i32) {
    %c0_i32 = arith.constant 0 : i32
    %c0_i32_0 = arith.constant 0 : i32
    %c0_i32_1 = arith.constant 0 : i32
    return %c0_i32, %c0_i32_0 : i32, i32
  }
  func.func @transform_5(%arg0: i32) -> (i32, i32) {
    %c0_i32 = arith.constant 0 : i32
    %c0_i32_0 = arith.constant 0 : i32
    %c0_i32_1 = arith.constant 0 : i32
    return %c0_i32, %c0_i32_0 : i32, i32
  }
  func.func @transform_6(%arg0: i32) -> (i32, i32) {
    %c0_i32 = arith.constant 0 : i32
    %c0_i32_0 = arith.constant 0 : i32
    %c0_i32_1 = arith.constant 0 : i32
    return %c0_i32, %c0_i32_0 : i32, i32
  }
  func.func @transform_7(%arg0: i32) -> (i32, i32) {
    %c0_i32 = arith.constant 0 : i32
    %c0_i32_0 = arith.constant 0 : i32
    return %arg0, %c0_i32 : i32, i32
  }
}

</mosaic_0001>

<bundles_post_ra>
// kernel: tpu_custom_call.1
= control target key start
LH: loop header
LB: loop body
LE: loop exit
PB: predicated region body
PF: predicated region fallthrough
CT: control target
= control target key end

     0   :  { %12 = vsyncpa [#allocation3], 0  ;;  %s790_s0 = inlined_call_operand.vmem [shape: f32[2,96], index: 0, kind: input, shape index: {}]   ;;  %s791_s1 = inlined_call_operand.hbm [shape: f32[96,256], index: 1, kind: input, shape index: {}]   ;;  %s792_s2 = inlined_call_operand.vmem [shape: f32[1,256], index: 2, kind: input, shape index: {}]   ;;  %s793_s3 = inlined_call_operand.hbm [shape: f32[256,128], index: 3, kind: input, shape index: {}]   ;;  %s794_s4 = inlined_call_operand.vmem [shape: f32[1,128], index: 4, kind: input, shape index: {}]   ;;  %s795_s5 = inlined_call_operand.vmem [shape: f32[128,4], index: 5, kind: input, shape index: {}]   ;;  %s796_s6 = inlined_call_operand.vmem [shape: f32[1,4], index: 6, kind: input, shape index: {}]   ;;  %s797_s7 = inlined_call_operand.hbm [shape: f32[2,4], index: 7, kind: output, shape index: {}]  }
   0x1   :  { %13 = vsyncpa [#allocation6], 0 }
   0x2   :  { %14 = vsyncpa [#allocation4], 0  ;;  %s642_s24 = smov [#allocation2]   ;;  %s570_s28 = scalar_lea.hbm %s791_s1, 3072 }
   0x3   :  { %s22_s25 = sshll.u32 %s642_s24, 4  ;;  %p571_p0 = scmp.ne.s32.totalorder %s791_s1, %s570_s28  ;;  %s23_s25 = int_to_ptr.vmem [resolvable:$true] %s22_s25 }
   0x4   :  { %p574_p1 = scmp.lt.u32.totalorder %s570_s28, %s791_s1 }
   0x6   :  { %p576_p2 = pnand %p574_p1, %p571_p0 }
   0x8   :  { %579 = shalt.err (!%p576_p2)
}
   0x9   :  { %s580_s10 = scalar_lea.vmem %s23_s25, 3072  ;;  %p585_p4 = scmp.lt.s32.totalorder %s23_s25, %s23_s25 }
   0xa   :  { %p581_p3 = scmp.ne.s32.totalorder %s23_s25, %s580_s10  ;;  %p586_p5 = scmp.lt.s32.totalorder %s580_s10, %s580_s10 }
   0xc   :  { %p587_p6 = por %p586_p5, %p585_p4 }
   0xe   :  { %p588_p7 = pnand %p587_p6, %p581_p3 }
  0x10   :  { %591 = shalt.err (!%p588_p7)
}
  0x11   :  { %s643_s11 = smov 256   ;;  %s644_s12 = smov 16  }
  0x12   :  { %28 = dma.hbm_to_vmem [thread:$0]  %s791_s1, 3072, %s23_s25, [#allocation3], %s643_s11, %s643_s11, %s644_s12  }
  0x13   :  { %s645_s15 = smov [#allocation5]   ;;  %s592_s19 = scalar_lea.hbm %s793_s3, 4096 }
  0x14   :  { %s36_s16 = sshll.u32 %s645_s15, 4  ;;  %p593_p8 = scmp.ne.s32.totalorder %s793_s3, %s592_s19  ;;  %s37_s16 = int_to_ptr.vmem [resolvable:$true] %s36_s16 }
  0x15   :  { %p596_p9 = scmp.lt.u32.totalorder %s592_s19, %s793_s3 }
  0x17   :  { %p598_p10 = pnand %p596_p9, %p593_p8 }
  0x19   :  { %601 = shalt.err (!%p598_p10)
}
  0x1a   :  { %s602_s24 = scalar_lea.vmem %s37_s16, 4096  ;;  %p607_p12 = scmp.lt.s32.totalorder %s37_s16, %s37_s16 }
  0x1b   :  { %p603_p11 = scmp.ne.s32.totalorder %s37_s16, %s602_s24  ;;  %p608_p13 = scmp.lt.s32.totalorder %s602_s24, %s602_s24 }
  0x1d   :  { %p609_p0 = por %p608_p13, %p607_p12 }
  0x1f   :  { %p610_p1 = pnand %p609_p0, %p603_p11 }
  0x21   :  { %613 = shalt.err (!%p610_p1)
}
  0x22   :  { %s646_s1 = smov 128   ;;  %s647_s25 = smov 8  }
  0x23   :  { %42 = dma.hbm_to_vmem [thread:$0]  %s793_s3, 4096, %s37_s16, [#allocation6], %s646_s1, %s646_s1, %s647_s25  }
  0x24   :  { %636 = dma.done.wait [#allocation3], 3072  }
  0x25   :  { %637 = vsyncadd [#allocation3], 4294964224 }
  0x26   :  { %638 = dma.done.wait [#allocation6], 4096  }
  0x27   :  { %639 = vsyncadd [#allocation6], 4294963200  ;;  %v648_v0 = vmov 0.0   ;;  %v57_v1 = vld [vmem:[#allocation2 + $0x8] sm:$0xff]  ;;  %v59_v2 = vld [vmem:[#allocation2 + $0x18] sm:$0xff]  ;;  %vm92_vm0 = vcmask 785408  }
  0x28   :  { %160 = vmatprep.mubr.f32.mxu0 %v648_v0  ;;  %v56_v3 = vld [vmem:[#allocation2] sm:$0xff]  ;;  %v480_v4 = vpack.c.bf16 %v59_v2, %v57_v1  ;;  %v58_v5 = vld [vmem:[#allocation2 + $0x10] sm:$0xff]  ;;  %v61_v6 = vld [vmem:[#allocation2 + $0x28] sm:$0xff]  ;;  %vm650_vm1 = vmmov 0   ;;  %vm372_vm2 = vcmask 25600  }
  0x29   :  { %v63_v7 = vld [vmem:[#allocation2 + $0x38] sm:$0xff]  ;;  %v482_v8 = vpack.c.bf16 %v58_v5, %v56_v3  ;;  %v60_v10 = vld [vmem:[#allocation2 + $0x20] sm:$0xff]  ;;  %v62_v11 = vld [vmem:[#allocation2 + $0x30] sm:$0xff] }
  0x2a   :  { %v484_v9 = vpack.c.bf16 %v63_v7, %v61_v6  ;;  %v65_v12 = vld [vmem:[#allocation2 + $0x48] sm:$0xff]  ;;  %481 = vmatprep.subr.bf16.mxu0 %v480_v4  ;;  %v67_v13 = vld [vmem:[#allocation2 + $0x58] sm:$0xff]  ;;  %v486_v14 = vpack.c.bf16 %v62_v11, %v60_v10  ;;  %v64_v16 = vld [vmem:[#allocation2 + $0x40] sm:$0xff] }
  0x2b   :  { %483 = vmatpush1.bf16.msra.mxu0 %v482_v8  ;;  %v488_v15 = vpack.c.bf16 %v67_v13, %v65_v12  ;;  %v66_v17 = vld [vmem:[#allocation2 + $0x50] sm:$0xff]  ;;  %v69_v18 = vld [vmem:[#allocation2 + $0x68] sm:$0xff]  ;;  %v71_v19 = vld [vmem:[#allocation2 + $0x78] sm:$0xff] }
  0x2c   :  { %485 = vmatprep.subr.bf16.mxu0 %v484_v9  ;;  %v68_v20 = vld [vmem:[#allocation2 + $0x60] sm:$0xff]  ;;  %v70_v21 = vld [vmem:[#allocation2 + $0x70] sm:$0xff]  ;;  %v490_v22 = vpack.c.bf16 %v66_v17, %v64_v16  ;;  %v73_v23 = vld [vmem:[#allocation2 + $0x88] sm:$0xff]  ;;  %v492_v27 = vpack.c.bf16 %v71_v19, %v69_v18 }
  0x2d   :  { %v75_v24 = vld [vmem:[#allocation2 + $0x98] sm:$0xff]  ;;  %v185_v25 = vld [vmem:[#allocation5 + $0x80] sm:$0xff]  ;;  %v186_v26 = vld [vmem:[#allocation5 + $0x88] sm:$0xff]  ;;  %v494_v39 = vpack.c.bf16 %v70_v21, %v68_v20 }
  0x2e   :  { %v504_v28 = vpack.c.bf16 %v186_v26, %v185_v25  ;;  %v169_v29 = vld [vmem:[#allocation5] sm:$0xff]  ;;  %v170_v30 = vld [vmem:[#allocation5 + $0x8] sm:$0xff]  ;;  %v187_v31 = vld [vmem:[#allocation5 + $0x90] sm:$0xff]  ;;  %v496_v43 = vpack.c.bf16 %v75_v24, %v73_v23  ;;  %v649_v26 = vmov 0.0|0.0  }
  0x2f   :  { %487 = vmatpush1.bf16.msra.mxu0 %v486_v14  ;;  %v506_v32 = vpack.c.bf16 %v170_v30, %v169_v29  ;;  %v188_v33 = vld [vmem:[#allocation5 + $0x98] sm:$0xff]  ;;  %v171_v34 = vld [vmem:[#allocation5 + $0x10] sm:$0xff]  ;;  %v189_v37 = vld [vmem:[#allocation5 + $0xa0] sm:$0xff] }
  0x30   :  { %489 = vmatprep.subr.bf16.mxu0 %v488_v15  ;;  %v172_v35 = vld [vmem:[#allocation5 + $0x18] sm:$0xff]  ;;  %505 = vmatprep.subr.bf16.mxu1 %v504_v28  ;;  %v508_v36 = vpack.c.bf16 %v188_v33, %v187_v31  ;;  %v190_v38 = vld [vmem:[#allocation5 + $0xa8] sm:$0xff]  ;;  %v72_v40 = vld [vmem:[#allocation2 + $0x80] sm:$0xff] }
  0x31   :  { %v74_v41 = vld [vmem:[#allocation2 + $0x90] sm:$0xff]  ;;  %507 = vmatpush3.bf16.msra.mxu1 %v506_v32  ;;  %v510_v42 = vpack.c.bf16 %v172_v35, %v171_v34  ;;  %v77_v44 = vld [vmem:[#allocation2 + $0xa8] sm:$0xff]  ;;  %v512_v45 = vpack.c.bf16 %v190_v38, %v189_v37  ;;  %v173_v46 = vld [vmem:[#allocation5 + $0x20] sm:$0xff] }
  0x32   :  { %509 = vmatprep.subr.bf16.mxu1 %v508_v36  ;;  %v174_v47 = vld [vmem:[#allocation5 + $0x28] sm:$0xff]  ;;  %v79_v48 = vld [vmem:[#allocation2 + $0xb8] sm:$0xff]  ;;  %v191_v49 = vld [vmem:[#allocation5 + $0xb0] sm:$0xff]  ;;  %v498_v51 = vpack.c.bf16 %v74_v41, %v72_v40 }
  0x33   :  { %491 = vmatpush1.bf16.msra.mxu0 %v490_v22  ;;  %v192_v50 = vld [vmem:[#allocation5 + $0xb8] sm:$0xff]  ;;  %v76_v52 = vld [vmem:[#allocation2 + $0xa0] sm:$0xff]  ;;  %v514_v53 = vpack.c.bf16 %v174_v47, %v173_v46  ;;  %v500_v54 = vpack.c.bf16 %v79_v48, %v77_v44  ;;  %v78_v55 = vld [vmem:[#allocation2 + $0xb0] sm:$0xff] }
  0x34   :  { %493 = vmatprep.subr.bf16.mxu0 %v492_v27  ;;  %v516_v56 = vpack.c.bf16 %v192_v50, %v191_v49  ;;  %v175_v57 = vld [vmem:[#allocation5 + $0x30] sm:$0xff]  ;;  %v176_v58 = vld [vmem:[#allocation5 + $0x38] sm:$0xff]  ;;  %v193_v59 = vld [vmem:[#allocation5 + $0xc0] sm:$0xff]  ;;  %v502_v61 = vpack.c.bf16 %v78_v55, %v76_v52 }
  0x35   :  { %511 = vmatpush3.bf16.msra.mxu1 %v510_v42  ;;  %v194_v60 = vld [vmem:[#allocation5 + $0xc8] sm:$0xff]  ;;  %v518_v62 = vpack.c.bf16 %v176_v58, %v175_v57  ;;  %v177_v1 = vld [vmem:[#allocation5 + $0x40] sm:$0xff]  ;;  %v195_v3 = vld [vmem:[#allocation5 + $0xd0] sm:$0xff]  ;;  %v82_v42 = vlaneseq }
  0x36   :  { %513 = vmatprep.subr.bf16.mxu1 %v512_v45  ;;  %v520_v63 = vpack.c.bf16 %v194_v60, %v193_v59  ;;  %v178_v2 = vld [vmem:[#allocation5 + $0x48] sm:$0xff]  ;;  %v196_v4 = vld [vmem:[#allocation5 + $0xd8] sm:$0xff]  ;;  %v55_v5 = vld [vmem:[%s790_s0] sm:$0x3] }
  0x37   :  { %495 = vmatpush1.bf16.msra.mxu0 %v494_v39  ;;  %v522_v6 = vpack.c.bf16 %v178_v2, %v177_v1  ;;  %v524_v7 = vpack.c.bf16 %v196_v4, %v195_v3  ;;  %v179_v8 = vld [vmem:[#allocation5 + $0x50] sm:$0xff]  ;;  %v180_v9 = vld [vmem:[#allocation5 + $0x58] sm:$0xff]  ;;  %v197_v10 = vld [vmem:[#allocation5 + $0xe0] sm:$0xff] }
  0x38   :  { %497 = vmatprep.subr.bf16.mxu0 %v496_v43  ;;  %v198_v11 = vld [vmem:[#allocation5 + $0xe8] sm:$0xff]  ;;  %v526_v12 = vpack.c.bf16 %v180_v9, %v179_v8  ;;  %v181_v14 = vld [vmem:[#allocation5 + $0x60] sm:$0xff]  ;;  %v199_v17 = vld [vmem:[#allocation5 + $0xf0] sm:$0xff]  ;;  %v83_v43 = vshrl.u32 %v82_v42, 7 }
  0x39   :  { %515 = vmatpush3.bf16.msra.mxu1 %v514_v53  ;;  %v528_v13 = vpack.c.bf16 %v198_v11, %v197_v10  ;;  %v182_v15 = vld [vmem:[#allocation5 + $0x68] sm:$0xff]  ;;  %v200_v18 = vld [vmem:[#allocation5 + $0xf8] sm:$0xff]  ;;  %v183_v20 = vld [vmem:[#allocation5 + $0x70] sm:$0xff] }
  0x3a   :  { %517 = vmatprep.subr.bf16.mxu1 %v516_v56  ;;  %v530_v16 = vpack.c.bf16 %v182_v15, %v181_v14  ;;  %v532_v19 = vpack.c.bf16 %v200_v18, %v199_v17  ;;  %v184_v21 = vld [vmem:[#allocation5 + $0x78] sm:$0xff]  ;;  %v279_v23 = vld [vmem:[%s795_s5] sm:$0xff]  ;;  %v280_v24 = vld [vmem:[%s795_s5 + $0x8] sm:$0xff]  ;;  %v84_v44 = vsub.s32 0, %v83_v43  ;;  %v88_v46 = vsub.s32 1, %v83_v43 }
  0x3b   :  { %499 = vmatpush1.bf16.msra.mxu0 %v498_v51  ;;  %v534_v22 = vpack.c.bf16 %v184_v21, %v183_v20  ;;  %v281_v25 = vld [vmem:[%s795_s5 + $0x10] sm:$0xff]  ;;  %v537_v27 = vpack.c.bf16 %v280_v24, %v279_v23  ;;  %v282_v28 = vld [vmem:[%s795_s5 + $0x18] sm:$0xff]  ;;  %v283_v30 = vld [vmem:[%s795_s5 + $0x20] sm:$0xff] }
  0x3c   :  { %501 = vmatprep.subr.bf16.mxu0 %v500_v54  ;;  %v540_v29 = vpack.c.bf16 %v282_v28, %v281_v25  ;;  %v284_v31 = vld [vmem:[%s795_s5 + $0x28] sm:$0xff]  ;;  %v285_v33 = vld [vmem:[%s795_s5 + $0x30] sm:$0xff]  ;;  %v286_v34 = vld [vmem:[%s795_s5 + $0x38] sm:$0xff] }
  0x3d   :  { %519 = vmatpush3.bf16.msra.mxu1 %v518_v62  ;;  %v543_v32 = vpack.c.bf16 %v284_v31, %v283_v30  ;;  %v546_v35 = vpack.c.bf16 %v286_v34, %v285_v33  ;;  %v287_v36 = vld [vmem:[%s795_s5 + $0x40] sm:$0xff]  ;;  %v288_v37 = vld [vmem:[%s795_s5 + $0x48] sm:$0xff]  ;;  %v289_v39 = vld [vmem:[%s795_s5 + $0x50] sm:$0xff] }
  0x3e   :  { %521 = vmatprep.subr.bf16.mxu1 %v520_v63  ;;  %v549_v38 = vpack.c.bf16 %v288_v37, %v287_v36  ;;  %v290_v40 = vld [vmem:[%s795_s5 + $0x58] sm:$0xff]  ;;  %v80_v45 = vld [vmem:[%s792_s2] sm:$0x3]  ;;  %v292_v56 = vld [vmem:[%s795_s5 + $0x68] sm:$0xff] }
  0x3f   :  { %503 = vmatpush1.bf16.msra.mxu0 %v502_v61  ;;  %v552_v41 = vpack.c.bf16 %v290_v40, %v289_v39  ;;  %v85_v47 = vrot.slane %v80_v45, %v84_v44  ;;  %v89_v48 = vrot.slane %v80_v45, %v88_v46  ;;  %v291_v55 = vld [vmem:[%s795_s5 + $0x60] sm:$0xff]  ;;  %v293_v58 = vld [vmem:[%s795_s5 + $0x70] sm:$0xff]  ;;  %v294_v59 = vld [vmem:[%s795_s5 + $0x78] sm:$0xff]  ;;  %s651_s5 = smov [#allocation7]  }
  0x40   :  { %536 = vmatprep.subr.bf16.mxu0 %v649_v26  ;;  %v555_v57 = vpack.c.bf16 %v292_v56, %v291_v55  ;;  %v558_v60 = vpack.c.bf16 %v294_v59, %v293_v58  ;;  %v391_v62 = vld [vmem:[%s794_s4] ss:$0 sm:$0xff]  ;;  %s380_s16 = sshll.u32 %s651_s5, 4  ;;  %s381_s16 = int_to_ptr.vmem [resolvable:$true] %s380_s16 }
  0x41   :  { %523 = vmatpush3.bf16.msra.mxu1 %v522_v6  ;;  %v392_v4 = vld [vmem:[%s796_s6] ss:$0 sm:$0xff]  ;;  %s614_s17 = scalar_lea.vmem %s381_s16, 32  ;;  %p619_p3 = scmp.lt.s32.totalorder %s381_s16, %s381_s16 }
  0x42   :  { %390 = vmatmul.mubr.msk.f32.vlgmr.msra.gmra.mrb[0].mxu0 %vm92_vm0, %v55_v5  ;;  %525 = vmatprep.subr.bf16.mxu1 %v524_v7  ;;  %p615_p2 = scmp.ne.s32.totalorder %s381_s16, %s614_s17  ;;  %p620_p4 = scmp.lt.s32.totalorder %s614_s17, %s614_s17 }
  0x43   :  { %538 = vmatpush3.bf16.msra.mxu0 %v537_v27  ;;  %477 = vmatprep.mubr.msk.f32.mxu0 %vm650_vm1, %v648_v0 }
  0x44   :  { %539 = vmatprep.subr.bf16.mxu0 %v649_v26  ;;  %p621_p5 = por %p620_p4, %p619_p3 }
  0x45   :  { %527 = vmatpush3.bf16.msra.mxu1 %v526_v12 }
  0x46   :  { %529 = vmatprep.subr.bf16.mxu1 %v528_v13  ;;  %p622_p6 = pnand %p621_p5, %p615_p2 }
  0x47   :  { %541 = vmatpush3.bf16.msra.mxu0 %v540_v29 }
  0x48   :  { %542 = vmatprep.subr.bf16.mxu0 %v649_v26 }
  0x49   :  { %531 = vmatpush3.bf16.msra.mxu1 %v530_v16 }
  0x4a   :  { %533 = vmatprep.subr.bf16.mxu1 %v532_v19 }
  0x4b   :  { %544 = vmatpush3.bf16.msra.mxu0 %v543_v32 }
  0x4c   :  { %545 = vmatprep.subr.bf16.mxu0 %v649_v26 }
  0x4d   :  { %535 = vmatpush3.bf16.msra.mxu1 %v534_v22 }
  0x4f   :  { %547 = vmatpush3.bf16.msra.mxu0 %v546_v35 }
  0x50   :  { %548 = vmatprep.subr.bf16.mxu0 %v649_v26 }
  0x53   :  { %550 = vmatpush3.bf16.msra.mxu0 %v549_v38 }
  0x54   :  { %551 = vmatprep.subr.bf16.mxu0 %v649_v26 }
  0x57   :  { %553 = vmatpush3.bf16.msra.mxu0 %v552_v41 }
  0x58   :  { %554 = vmatprep.subr.bf16.mxu0 %v649_v26 }
  0x5b   :  { %556 = vmatpush3.bf16.msra.mxu0 %v555_v57 }
  0x5c   :  { %557 = vmatprep.subr.bf16.mxu0 %v649_v26 }
  0x5f   :  { %559 = vmatpush3.bf16.msra.mxu0 %v558_v60 }
 0x115   :  { %v162_v49 = vpop.f32.mrb[0].mxu0 }
 0x116   :  { %v163_v50 = vadd.f32 %v162_v49, %v85_v47  ;;  %v164_v51 = vpop.f32.mrb[1].mxu0 }
 0x117   :  { %v165_v52 = vadd.f32 %v164_v51, %v89_v48 }
 0x118   :  { %v167_v54 = vmax.f32 %v163_v50, 0.0 }
 0x119   :  { %v168_v53 = vmax.f32 %v165_v52, 0.0 }
 0x11b   :  { %272 = vmatprep.mubr.f32.mxu1 %v168_v53 }
 0x11c   :  { %273 = vmatmul.mubr.f32.vlgmr.msra.gmra.mrb[0].mxu1 %v167_v54 }
 0x1ef   :  { %v425_v61 = vpop.f32.mrb[0].mxu1 }
 0x1f0   :  { %v426_v63 = vpop.f32.mrb[1].mxu1 }
 0x1f1   :  { %v427_v1 = vadd.f32 %v426_v63, %v425_v61 }
 0x1f3   :  { %v275_v2 = vadd.f32 %v427_v1, %v391_v62 }
 0x1f5   :  { %v278_v3 = vmax.f32 %v275_v2, 0.0 }
 0x1f7   :  { %478 = vmatmul.mubr.f32.vlgmr.msra.gmra.mrb[2].mxu0 %v278_v3 }
 0x2ca   :  { %v368_v5 = vpop.f32.mrb[2].mxu0 }
 0x2cb   :  { %v369_v6 = vadd.f32 %v392_v4, %v368_v5  ;;  %v479_v0 = vpop.f32.mrb[3].mxu0 }
 0x2cd   :  { %373 = vst.msk [vmem:[#allocation7] sm:$0x3] %vm372_vm2, %v369_v6 }
 0x2ce   :  { %625 = shalt.err (!%p622_p6)
}
 0x2cf   :  { %s626_s19 = scalar_lea.hbm %s797_s7, 32 }
 0x2d0   :  { %p627_p7 = scmp.ne.s32.totalorder %s797_s7, %s626_s19  ;;  %p630_p8 = scmp.lt.u32.totalorder %s626_s19, %s797_s7 }
 0x2d2   :  { %p632_p9 = pnand %p630_p8, %p627_p7 }
 0x2d4   :  { %635 = shalt.err (!%p632_p9)
}
 0x2d5   :  { %383 = dma.vmem_to_hbm [thread:$0]  %s381_s16, 32, %s797_s7, [#allocation4]  }
 0x2d6   :  { %640 = dma.done.wait [#allocation4], 32  }
 0x2d7   :  { %641 = vsyncadd [#allocation4], 4294967264 }
 0x2d8   :  { %387 = vsyncpa [#allocation3], 1 }
 0x2d9   :  { %388 = vsyncpa [#allocation6], 1 }
 0x2da   :  { %389 = vsyncpa [#allocation4], 1 }

</bundles_post_ra>
